<compile_context>
chip_gen: v7x
topology: tpu7x:2x2x1
jax: 0.10.0
libtpu: 0.0.40
codegen_flags: <defaults>
</compile_context>

<pallas_src>
import jax
import jax.numpy as jnp
from jax.experimental import pallas as pl
from jax.experimental.pallas import tpu as pltpu

NORM_EPS = 1e-12                     # torch.nn.functional.normalize default
VMEM_LIMIT_BYTES = 64 * 1024 * 1024  # within physical VMEM on v5e/v6e/v7x


def _round_up(n, m):
    return ((n + m - 1) // m) * m


def _encoder_kernel(x_ref, w_ref, b_ref, o_ref):
    # ---- L1: x @ W + b on the MXU, f32 accumulation ----
    y = jnp.dot(x_ref[...], w_ref[...], preferred_element_type=jnp.float32)
    y = y + b_ref[...].astype(jnp.float32)

    # ---- F.normalize(p=2, dim=1) ----
    # y / max(||y||, eps)  ==  y * rsqrt(max(sum(y^2), eps^2))
    sumsq = jnp.sum(y * y, axis=1, keepdims=True)
    inv_norm = jax.lax.rsqrt(jnp.maximum(sumsq, NORM_EPS * NORM_EPS))
    o_ref[...] = (y * inv_norm).astype(o_ref.dtype)


def _pick_batch_tile(B, Dp, Ep, matmul_bytes):
    """Largest sublane-aligned batch tile whose working set fits the VMEM budget."""
    weight_bytes = Dp * Ep * matmul_bytes + Ep * 4
    # 2x for double-buffering of the streamed x tile and out tile.
    budget = VMEM_LIMIT_BYTES - weight_bytes - (4 << 20)  # headroom
    per_row = 2 * (Dp * matmul_bytes + Ep * 4)
    tb_cap = max(8, (budget // max(per_row, 1)) // 8 * 8)
    tb = min(512, tb_cap, _round_up(B, 8))
    return max(8, tb)


def linear_encoder(x, w, b, *, matmul_dtype=jnp.float32):
    """LINEAR_ENCODER forward.

    x: (B, Din) or (B, 1, Din) float32
    w: (Din, E)  float32  (== PyTorch L1.weight.T)
    b: (1, E)    float32  (== PyTorch L1.bias)
    returns (B, E) float32, L2-normalized along dim=1.
    """
    # PyTorch path: 3-D input (B, 1, Din) -> squeeze(1)
    if x.ndim == 3:
        x = jnp.squeeze(x, axis=1)

    B, Din = x.shape
    E = w.shape[1]

    # Lane-dense layout: pad feature dims up to multiples of 128.
    # Zero rows/cols of W and zero bias entries leave the result unchanged.
    Dp = _round_up(Din, 128)
    Ep = _round_up(E, 128)
    if Dp != Din:
        x = jnp.pad(x, ((0, 0), (0, Dp - Din)))
        w = jnp.pad(w, ((0, Dp - Din), (0, 0)))
    if Ep != E:
        w = jnp.pad(w, ((0, 0), (0, Ep - E)))
        b = jnp.pad(b, ((0, 0), (0, Ep - E)))

    mm_bytes = jnp.dtype(matmul_dtype).itemsize
    tb = _pick_batch_tile(B, Dp, Ep, mm_bytes)

    # Pad B so the grid divides evenly. Padded (all-zero) rows produce finite
    # all-zero outputs (sumsq clamped to eps^2) and are sliced off below.
    Bp = _round_up(B, tb)
    if Bp != B:
        x = jnp.pad(x, ((0, Bp - B), (0, 0)))

    # Optional bf16 matmul inputs; accumulation in the kernel is f32 regardless.
    x = x.astype(matmul_dtype)
    w = w.astype(matmul_dtype)

    grid = (Bp // tb,)
    out = pl.pallas_call(
        _encoder_kernel,
        out_shape=jax.ShapeDtypeStruct((Bp, Ep), jnp.float32),
        grid_spec=pltpu.PrefetchScalarGridSpec(
            num_scalar_prefetch=0,
            grid=grid,
            in_specs=[
                pl.BlockSpec((tb, Dp), lambda i: (i, 0)),   # x tile (pipelined)
                pl.BlockSpec((Dp, Ep), lambda i: (0, 0)),   # W resident in VMEM
                pl.BlockSpec((1, Ep), lambda i: (0, 0)),    # bias resident
            ],
            out_specs=pl.BlockSpec((tb, Ep), lambda i: (i, 0)),
        ),
        compiler_params=pltpu.CompilerParams(
            dimension_semantics=("parallel",),   # megacore: shard batch tiles
            vmem_limit_bytes=VMEM_LIMIT_BYTES,
        ),
    )(x, w, b)

    return out[:B, :E]


def _reference(x, w, b):
    if x.ndim == 3:
        x = jnp.squeeze(x, axis=1)
    y = x @ w + b
    n = jnp.sqrt((y * y).sum(1, keepdims=True))
    return y / jnp.maximum(n, NORM_EPS)


if __name__ == "__main__":
    # Small shapes implied by cfg.IMGF.input_dim / embedding_dim.
    B, INPUT_DIM, EMB_DIM = 8, 32, 32

    key = jax.random.PRNGKey(0)
    kx, kw, kb = jax.random.split(key, 3)

    # 3-D input exercises the squeeze(1) path of forward().
    x = jax.random.normal(kx, (B, 1, INPUT_DIM), jnp.float32)

    initrange = 0.1  # init_trainable_weights
    w = jax.random.uniform(kw, (INPUT_DIM, EMB_DIM), jnp.float32,
                           -initrange, initrange)
    bound = 1.0 / (INPUT_DIM ** 0.5)  # nn.Linear default bias init range
    b = jax.random.uniform(kb, (1, EMB_DIM), jnp.float32, -bound, bound)

    out = linear_encoder(x, w, b)
    out = jax.block_until_ready(out)

    ref = _reference(x, w, b)
    assert out.shape == (B, EMB_DIM)
    assert jnp.allclose(out, ref, atol=1e-5, rtol=1e-5)
    print("KERNEL_OK")
</pallas_src>

<mosaic_0001>
module attributes {stable_mosaic.version = 11 : i64} {
  func.func @_encoder_kernel(%arg0: i32, %arg1: memref<8x128xf32, #tpu.memory_space<vmem>>, %arg2: memref<128x128xf32, #tpu.memory_space<vmem>>, %arg3: memref<1x128xf32, #tpu.memory_space<vmem>>, %arg4: memref<8x128xf32, #tpu.memory_space<vmem>>) attributes {dimension_semantics = [#tpu.dimension_semantics<parallel>], iteration_bounds = array<i64: 1>, scalar_prefetch = 0 : i64, scratch_operands = 0 : i64, tpu.core_type = #tpu.core_type<tc>, window_params = [{transform_indices = @transform_0, window_bounds = array<i64: 8, 128>}, {pipeline_mode = #tpu.pipeline_mode<synchronous>, transform_indices = @transform_1, window_bounds = array<i64: 128, 128>}, {pipeline_mode = #tpu.pipeline_mode<synchronous>, transform_indices = @transform_2, window_bounds = array<i64: 1, 128>}, {transform_indices = @transform_3, window_bounds = array<i64: 8, 128>}]} {
    %c0 = arith.constant 0 : index
    %c0_0 = arith.constant 0 : index
    %0 = vector.load %arg1[%c0, %c0_0] : memref<8x128xf32, #tpu.memory_space<vmem>>, vector<8x128xf32>
    %c0_1 = arith.constant 0 : index
    %c0_2 = arith.constant 0 : index
    %1 = vector.load %arg2[%c0_1, %c0_2] : memref<128x128xf32, #tpu.memory_space<vmem>>, vector<128x128xf32>
    %cst = arith.constant dense<0.000000e+00> : vector<8x128xf32>
    %2 = tpu.matmul %0, %1, %cst {dimension_numbers = #tpu.dot_dimension_numbers<[1], [0], [0], [1], [0, 0, 1, 1], [], []>} : vector<8x128xf32>, vector<128x128xf32>, vector<8x128xf32> -> vector<8x128xf32>
    %c0_3 = arith.constant 0 : index
    %c0_4 = arith.constant 0 : index
    %3 = vector.load %arg3[%c0_3, %c0_4] : memref<1x128xf32, #tpu.memory_space<vmem>>, vector<1x128xf32>
    %4 = vector.broadcast %3 : vector<1x128xf32> to vector<8x128xf32>
    %5 = arith.addf %2, %4 : vector<8x128xf32>
    %6 = arith.mulf %5, %5 : vector<8x128xf32>
    %cst_5 = arith.constant dense<0.000000e+00> : vector<8xf32>
    %7 = vector.multi_reduction <add>, %6, %cst_5 [1] : vector<8x128xf32> to vector<8xf32>
    %8 = vector.shape_cast %7 : vector<8xf32> to vector<8x1xf32>
    %cst_6 = arith.constant 1.000000e-24 : f32
    %9 = vector.broadcast %cst_6 : f32 to vector<8x1xf32>
    %10 = arith.maximumf %8, %9 : vector<8x1xf32>
    %11 = math.rsqrt %10 : vector<8x1xf32>
    %12 = vector.broadcast %11 : vector<8x1xf32> to vector<8x128xf32>
    %13 = arith.mulf %5, %12 : vector<8x128xf32>
    %c0_7 = arith.constant 0 : index
    %c0_8 = arith.constant 0 : index
    %14 = vector.load %arg4[%c0_7, %c0_8] : memref<8x128xf32, #tpu.memory_space<vmem>>, vector<8x128xf32>
    tpu.vector_store %arg4[%c0_7, %c0_8], %13 {strides = array<i32>} : memref<8x128xf32, #tpu.memory_space<vmem>>, vector<8x128xf32>,
    return
  }
  func.func @transform_0(%arg0: i32) -> (i32, i32) {
    %c0_i32 = arith.constant 0 : i32
    %c0_i32_0 = arith.constant 0 : i32
    return %arg0, %c0_i32 : i32, i32
  }
  func.func @transform_1(%arg0: i32) -> (i32, i32) {
    %c0_i32 = arith.constant 0 : i32
    %c0_i32_0 = arith.constant 0 : i32
    %c0_i32_1 = arith.constant 0 : i32
    return %c0_i32, %c0_i32_0 : i32, i32
  }
  func.func @transform_2(%arg0: i32) -> (i32, i32) {
    %c0_i32 = arith.constant 0 : i32
    %c0_i32_0 = arith.constant 0 : i32
    %c0_i32_1 = arith.constant 0 : i32
    return %c0_i32, %c0_i32_0 : i32, i32
  }
  func.func @transform_3(%arg0: i32) -> (i32, i32) {
    %c0_i32 = arith.constant 0 : i32
    %c0_i32_0 = arith.constant 0 : i32
    return %arg0, %c0_i32 : i32, i32
  }
}

</mosaic_0001>

<bundles_post_ra>
// kernel: tpu_custom_call.1
= control target key start
LH: loop header
LB: loop body
LE: loop exit
PB: predicated region body
PF: predicated region fallthrough
CT: control target
= control target key end

     0   :  { %8 = vsyncpa [#allocation3], 0  ;;  %s428_s0 = inlined_call_operand.hbm [shape: f32[8,128], index: 0, kind: input, shape index: {}]   ;;  %s429_s1 = inlined_call_operand.hbm [shape: f32[128,128], index: 1, kind: input, shape index: {}]   ;;  %s430_s2 = inlined_call_operand.hbm [shape: f32[1,128], index: 2, kind: input, shape index: {}]   ;;  %s431_s3 = inlined_call_operand.hbm [shape: f32[8,128], index: 3, kind: output, shape index: {}]  }
   0x1   :  { %9 = vsyncpa [#allocation6], 0 }
   0x2   :  { %10 = vsyncpa [#allocation4], 0  ;;  %s351_s12 = smov [#allocation5]   ;;  %s257_s16 = scalar_lea.hbm %s429_s1, 2048 }
   0x3   :  { %s26_s13 = sshll.u32 %s351_s12, 4  ;;  %p258_p0 = scmp.ne.s32.totalorder %s429_s1, %s257_s16  ;;  %s27_s13 = int_to_ptr.vmem [resolvable:$true] %s26_s13 }
   0x4   :  { %p261_p1 = scmp.lt.u32.totalorder %s257_s16, %s429_s1 }
   0x6   :  { %p263_p2 = pnand %p261_p1, %p258_p0 }
   0x8   :  { %266 = shalt.err (!%p263_p2)
}
   0x9   :  { %s267_s21 = scalar_lea.vmem %s27_s13, 2048  ;;  %p272_p4 = scmp.lt.s32.totalorder %s27_s13, %s27_s13 }
   0xa   :  { %p268_p3 = scmp.ne.s32.totalorder %s27_s13, %s267_s21  ;;  %p273_p5 = scmp.lt.s32.totalorder %s267_s21, %s267_s21 }
   0xc   :  { %p274_p6 = por %p273_p5, %p272_p4 }
   0xe   :  { %p275_p7 = pnand %p274_p6, %p268_p3 }
  0x10   :  { %278 = shalt.err (!%p275_p7)
}
  0x11   :  { %s352_s22 = smov 128   ;;  %s353_s23 = smov 8  }
  0x12   :  { %32 = dma.hbm_to_vmem [thread:$0]  %s429_s1, 2048, %s27_s13, [#allocation6], %s352_s22, %s352_s22, %s353_s23  }
  0x13   :  { %s354_s26 = smov [#allocation2]   ;;  %s355_s28 = smov [#allocation7]  }
  0x14   :  { %s17_s27 = sshll.u32 %s354_s26, 4  ;;  %s39_s29 = sshll.u32 %s355_s28, 4  ;;  %s18_s27 = int_to_ptr.vmem [resolvable:$true] %s17_s27  ;;  %s40_s29 = int_to_ptr.vmem [resolvable:$true] %s39_s29 }
  0x15   :  { %s279_s5 = scalar_lea.hbm %s428_s0, 128 }
  0x16   :  { %p280_p8 = scmp.ne.s32.totalorder %s428_s0, %s279_s5  ;;  %p283_p9 = scmp.lt.u32.totalorder %s279_s5, %s428_s0 }
  0x18   :  { %p285_p10 = pnand %p283_p9, %p280_p8 }
  0x1a   :  { %288 = shalt.err (!%p285_p10)
}
  0x1b   :  { %s289_s1 = scalar_lea.vmem %s18_s27, 128  ;;  %p294_p12 = scmp.lt.s32.totalorder %s18_s27, %s18_s27 }
  0x1c   :  { %p290_p11 = scmp.ne.s32.totalorder %s18_s27, %s289_s1  ;;  %p295_p13 = scmp.lt.s32.totalorder %s289_s1, %s289_s1 }
  0x1e   :  { %p296_p0 = por %p295_p13, %p294_p12 }
  0x20   :  { %p297_p1 = pnand %p296_p0, %p290_p11 }
  0x22   :  { %300 = shalt.err (!%p297_p1)
}
  0x23   :  { %20 = dma.hbm_to_vmem [thread:$0]  %s428_s0, 128, %s18_s27, [#allocation3]  }
  0x24   :  { %s301_s14 = scalar_lea.hbm %s430_s2, 16 }
  0x25   :  { %p302_p2 = scmp.ne.s32.totalorder %s430_s2, %s301_s14  ;;  %p305_p3 = scmp.lt.u32.totalorder %s301_s14, %s430_s2 }
  0x27   :  { %p307_p4 = pnand %p305_p3, %p302_p2 }
  0x29   :  { %310 = shalt.err (!%p307_p4)
}
  0x2a   :  { %s311_s19 = scalar_lea.vmem %s40_s29, 16  ;;  %s315_s20 = scalar_lea.vmem %s40_s29, 32 }
  0x2b   :  { %p312_p5 = scmp.ne.s32.totalorder %s40_s29, %s311_s19  ;;  %p316_p6 = scmp.lt.s32.totalorder %s40_s29, %s40_s29 }
  0x2c   :  { %p317_p7 = scmp.lt.s32.totalorder %s315_s20, %s311_s19 }
  0x2e   :  { %p318_p8 = por %p317_p7, %p316_p6 }
  0x30   :  { %p319_p9 = pnand %p318_p8, %p312_p5 }
  0x32   :  { %322 = shalt.err (!%p319_p9)
}
  0x33   :  { %42 = dma.hbm_to_vmem [thread:$0]  %s430_s2, 16, %s40_s29, [#allocation6]  }
  0x34   :  { %345 = dma.done.wait [#allocation3], 128  }
  0x35   :  { %346 = vsyncadd [#allocation3], 4294967168 }
  0x36   :  { %347 = dma.done.wait [#allocation6], 2064  }
  0x37   :  { %348 = vsyncadd [#allocation6], 4294965232  ;;  %v356_v0 = vmov 0.0|0.0   ;;  %vm357_vm0 = vmmov 0   ;;  %v358_v1 = vmov 0.0   ;;  %v53_v2 = vld [vmem:[#allocation5] sm:$0xff] }
  0x38   :  { %222 = vmatprep.subr.bf16.mxu0 %v356_v0  ;;  %219 = vmatprep.mubr.msk.f32.mxu0 %vm357_vm0, %v358_v1  ;;  %v54_v3 = vld [vmem:[#allocation5 + $0x8] sm:$0xff]  ;;  %v55_v4 = vld [vmem:[#allocation5 + $0x10] sm:$0xff]  ;;  %v56_v6 = vld [vmem:[#allocation5 + $0x18] sm:$0xff]  ;;  %s359_s2 = smov [#allocation8]  }
  0x39   :  { %v223_v5 = vpack.c.bf16 %v54_v3, %v53_v2  ;;  %v226_v7 = vpack.c.bf16 %v56_v6, %v55_v4  ;;  %v57_v8 = vld [vmem:[#allocation5 + $0x20] sm:$0xff]  ;;  %v58_v9 = vld [vmem:[#allocation5 + $0x28] sm:$0xff]  ;;  %v59_v11 = vld [vmem:[#allocation5 + $0x30] sm:$0xff]  ;;  %s159_s22 = sshll.u32 %s359_s2, 4  ;;  %s160_s22 = int_to_ptr.vmem [resolvable:$true] %s159_s22 }
  0x3a   :  { %v229_v10 = vpack.c.bf16 %v58_v9, %v57_v8  ;;  %v60_v12 = vld [vmem:[#allocation5 + $0x38] sm:$0xff]  ;;  %v61_v14 = vld [vmem:[#allocation5 + $0x40] sm:$0xff]  ;;  %v62_v15 = vld [vmem:[#allocation5 + $0x48] sm:$0xff]  ;;  %s323_s23 = scalar_lea.vmem %s160_s22, 128  ;;  %p328_p11 = scmp.lt.s32.totalorder %s160_s22, %s160_s22 }
  0x3b   :  { %224 = vmatpush3.bf16.msra.mxu0 %v223_v5  ;;  %v232_v13 = vpack.c.bf16 %v60_v12, %v59_v11  ;;  %v235_v16 = vpack.c.bf16 %v62_v15, %v61_v14  ;;  %v63_v17 = vld [vmem:[#allocation5 + $0x50] sm:$0xff]  ;;  %v64_v18 = vld [vmem:[#allocation5 + $0x58] sm:$0xff]  ;;  %v65_v20 = vld [vmem:[#allocation5 + $0x60] sm:$0xff]  ;;  %p324_p10 = scmp.ne.s32.totalorder %s160_s22, %s323_s23  ;;  %p329_p12 = scmp.lt.s32.totalorder %s323_s23, %s323_s23 }
  0x3c   :  { %225 = vmatprep.subr.bf16.mxu0 %v356_v0  ;;  %v238_v19 = vpack.c.bf16 %v64_v18, %v63_v17  ;;  %v66_v21 = vld [vmem:[#allocation5 + $0x68] sm:$0xff]  ;;  %v67_v23 = vld [vmem:[#allocation5 + $0x70] sm:$0xff]  ;;  %v68_v24 = vld [vmem:[#allocation5 + $0x78] sm:$0xff] }
  0x3d   :  { %v241_v22 = vpack.c.bf16 %v66_v21, %v65_v20  ;;  %v244_v25 = vpack.c.bf16 %v68_v24, %v67_v23  ;;  %v52_v26 = vld [vmem:[#allocation2] sm:$0xff]  ;;  %v169_v27 = vld [vmem:[#allocation7] ss:$0 sm:$0xff]  ;;  %p330_p13 = por %p329_p12, %p328_p11 }
  0x3f   :  { %227 = vmatpush3.bf16.msra.mxu0 %v226_v7  ;;  %p331_p0 = pnand %p330_p13, %p324_p10 }
  0x40   :  { %228 = vmatprep.subr.bf16.mxu0 %v356_v0 }
  0x43   :  { %230 = vmatpush3.bf16.msra.mxu0 %v229_v10 }
  0x44   :  { %231 = vmatprep.subr.bf16.mxu0 %v356_v0 }
  0x47   :  { %233 = vmatpush3.bf16.msra.mxu0 %v232_v13 }
  0x48   :  { %234 = vmatprep.subr.bf16.mxu0 %v356_v0 }
  0x4b   :  { %236 = vmatpush3.bf16.msra.mxu0 %v235_v16 }
  0x4c   :  { %237 = vmatprep.subr.bf16.mxu0 %v356_v0 }
  0x4f   :  { %239 = vmatpush3.bf16.msra.mxu0 %v238_v19 }
  0x50   :  { %240 = vmatprep.subr.bf16.mxu0 %v356_v0 }
  0x53   :  { %242 = vmatpush3.bf16.msra.mxu0 %v241_v22 }
  0x54   :  { %243 = vmatprep.subr.bf16.mxu0 %v356_v0 }
  0x57   :  { %245 = vmatpush3.bf16.msra.mxu0 %v244_v25 }
  0x5a   :  { %220 = vmatmul.mubr.f32.vlgmr.msra.gmra.mrb[0].mxu0 %v52_v26 }
 0x12d   :  { %v142_v28 = vpop.f32.mrb[0].mxu0 }
 0x12e   :  { %v143_v29 = vadd.f32 %v169_v27, %v142_v28  ;;  %v221_v30 = vpop.f32.mrb[1].mxu0 }
 0x130   :  { %v146_v31 = vmul.f32 %v143_v29, %v143_v29 }
 0x132   :  { %147 = vadd.xlane.f32.xlu0 %v146_v31 }
 0x1bf   :  { %v148_v32 = vpop.xlane.xlu0 %147 }
 0x1c0   :  { %v149_v33 = vmax.f32 %v148_v32, 1e-24 }
 0x1c2   :  { %255 = vrsqrt.f32 %v149_v33 }
 0x1cc   :  { %v256_v34 = vpop.eup %255 }
 0x1cd   :  { %v151_v35 = vmul.f32 %v256_v34, %v143_v29 }
 0x1cf   :  { %152 = vst [vmem:[#allocation8] sm:$0xff] %v151_v35 }
 0x1d0   :  { %334 = shalt.err (!%p331_p0)
}
 0x1d1   :  { %s335_s26 = scalar_lea.hbm %s431_s3, 128 }
 0x1d2   :  { %p336_p1 = scmp.ne.s32.totalorder %s431_s3, %s335_s26  ;;  %p339_p2 = scmp.lt.u32.totalorder %s335_s26, %s431_s3 }
 0x1d4   :  { %p341_p3 = pnand %p339_p2, %p336_p1 }
 0x1d6   :  { %344 = shalt.err (!%p341_p3)
}
 0x1d7   :  { %162 = dma.vmem_to_hbm [thread:$0]  %s160_s22, 128, %s431_s3, [#allocation4]  }
 0x1d8   :  { %349 = dma.done.wait [#allocation4], 128  }
 0x1d9   :  { %350 = vsyncadd [#allocation4], 4294967168 }
 0x1da   :  { %166 = vsyncpa [#allocation3], 1 }
 0x1db   :  { %167 = vsyncpa [#allocation6], 1 }
 0x1dc   :  { %168 = vsyncpa [#allocation4], 1 }

</bundles_post_ra>
